<compile_context>
chip_gen: v7x
topology: tpu7x:2x2x1
jax: 0.10.0
libtpu: 0.0.40
codegen_flags: <defaults>
</compile_context>

<pallas_src>
import functools

import jax
import jax.numpy as jnp
from jax.experimental import pallas as pl
from jax.experimental.pallas import tpu as pltpu

_LANES = 128
# 1024 rows x 128 lanes x 4 B = 512 KiB per array per buffer.
_DEFAULT_BLOCK_ROWS = 1024


def _round_up(x: int, m: int) -> int:
    return (x + m - 1) // m * m


# ----------------------------- kernels --------------------------------------


def _aggr_kernel(a_ref, b_ref, c_ref, o_ref):
    # out = z_low + z_up + z_har   (pure VPU, HBM-bandwidth bound)
    o_ref[...] = a_ref[...] + b_ref[...] + c_ref[...]


def _aggr_affine_elu_kernel(a_ref, b_ref, c_ref, scale_ref, shift_ref, o_ref):
    # out = ELU( (z_low + z_up + z_har) * scale + shift )
    # scale/shift carry the folded BatchNorm statistics (per-feature affine),
    # kept in f32; compute in f32, cast on store (bf16-activation friendly).
    s = (a_ref[...] + b_ref[...] + c_ref[...]).astype(jnp.float32)
    y = s * scale_ref[...] + shift_ref[...]
    # ELU(alpha=1): y if y > 0 else exp(y) - 1.  min() keeps the unselected
    # branch finite; exp goes to the EUP (free slot on a mem-bound kernel).
    o_ref[...] = jnp.where(
        y > 0, y, jnp.exp(jnp.minimum(y, 0.0)) - 1.0
    ).astype(o_ref.dtype)


def _segment_pool_elu_kernel(x_ref, bi_ref, o_ref, *, num_graphs):
    # Readout tail of SupSCN.forward:
    #   ELU( concat([global_max_pool(x, b), global_mean_pool(x, b)], dim=1) )
    # Single grid point; segments handled with masked sublane reductions (XLU).
    x = x_ref[...].astype(jnp.float32)          # (E, F)
    bi = bi_ref[...]                            # (E, 1) int32
    neg = jnp.full_like(x, -jnp.inf)
    rows = []
    for g in range(num_graphs):                 # static, small unroll
        m = bi == g                             # (E, 1)
        xmax = jnp.max(jnp.where(m, x, neg), axis=0, keepdims=True)   # (1, F)
        xsum = jnp.sum(jnp.where(m, x, 0.0), axis=0, keepdims=True)   # (1, F)
        cnt = jnp.sum(m.astype(jnp.float32), axis=0, keepdims=True)   # (1, 1)
        xmean = xsum / jnp.maximum(cnt, 1.0)
        rows.append(jnp.concatenate([xmax, xmean], axis=1))           # (1, 2F)
    y = jnp.concatenate(rows, axis=0)                                 # (G, 2F)
    o_ref[...] = jnp.where(
        y > 0, y, jnp.exp(jnp.minimum(y, 0.0)) - 1.0
    ).astype(o_ref.dtype)


# ----------------------------- wrappers -------------------------------------


def _flatten_lane_dense(x: jax.Array) -> jax.Array:
    """Reshape to a lane-dense (rows, 128) view; zero-pads if size % 128 != 0."""
    total = x.size
    flat = x.reshape(-1)
    padded = _round_up(total, _LANES)
    if padded != total:
        flat = jnp.pad(flat, (0, padded - total))
    return flat.reshape(padded // _LANES, _LANES)


def aggr_x(z_low: jax.Array, z_up: jax.Array, z_har: jax.Array, *,
           block_rows: int = _DEFAULT_BLOCK_ROWS,
           donate_z_low: bool = False) -> jax.Array:
    """BaseNet.aggr_x as a tiled, lane-dense, pipelined Pallas kernel."""
    assert z_low.shape == z_up.shape == z_har.shape
    assert z_low.dtype == z_up.dtype == z_har.dtype
    assert block_rows > 0 and block_rows % 8 == 0

    orig_shape = z_low.shape
    total = z_low.size

    a = _flatten_lane_dense(z_low)
    b = _flatten_lane_dense(z_up)
    c = _flatten_lane_dense(z_har)
    rows = a.shape[0]

    # Single block == full array (always legal) or multiple-of-8 blocks with a
    # masked ragged tail.
    tb = rows if rows <= block_rows else block_rows
    grid = (pl.cdiv(rows, tb),)
    spec = pl.BlockSpec((tb, _LANES), lambda i: (i, 0))

    out_flat = pl.pallas_call(
        _aggr_kernel,
        out_shape=jax.ShapeDtypeStruct((rows, _LANES), a.dtype),
        grid=grid,
        in_specs=[spec, spec, spec],
        out_specs=spec,
        input_output_aliases={0: 0} if donate_z_low else {},
        compiler_params=pltpu.CompilerParams(dimension_semantics=("parallel",)),
    )(a, b, c)

    return out_flat.reshape(-1)[:total].reshape(orig_shape)


def aggr_bn_elu(z_low: jax.Array, z_up: jax.Array, z_har: jax.Array,
                scale_f: jax.Array, shift_f: jax.Array, *,
                block_rows: int = _DEFAULT_BLOCK_ROWS,
                donate_z_low: bool = False) -> jax.Array:
    """Fused per-layer tail of SupSCN.forward:
         ELU( (z_low + z_up + z_har) * scale + shift )
    where scale = gamma / sqrt(var + eps), shift = beta - mean * scale
    (BatchNorm1d with folded statistics)."""
    assert z_low.shape == z_up.shape == z_har.shape
    assert z_low.dtype == z_up.dtype == z_har.dtype
    assert block_rows > 0 and block_rows % 8 == 0

    E, F = z_low.shape
    dtype = z_low.dtype
    total = E * F

    scale_f = scale_f.astype(jnp.float32)
    shift_f = shift_f.astype(jnp.float32)

    lane_dense = (_LANES % F == 0)
    if lane_dense:
        # Flattened lane-dense layout: each 128-lane row holds 128//F edges,
        # so the per-feature affine params simply tile across the lanes.
        a = _flatten_lane_dense(z_low)
        b = _flatten_lane_dense(z_up)
        c = _flatten_lane_dense(z_har)
        scale = jnp.tile(scale_f, _LANES // F).reshape(1, _LANES)
        shift = jnp.tile(shift_f, _LANES // F).reshape(1, _LANES)
    else:
        # Fallback: keep (E, F) layout (block last dim == full F is legal).
        a, b, c = z_low, z_up, z_har
        scale = scale_f.reshape(1, F)
        shift = shift_f.reshape(1, F)

    rows, cols = a.shape
    tb = rows if rows <= block_rows else block_rows
    grid = (pl.cdiv(rows, tb),)
    data_spec = pl.BlockSpec((tb, cols), lambda i: (i, 0))
    vec_spec = pl.BlockSpec((1, cols), lambda i: (0, 0))   # resident, loaded once

    out = pl.pallas_call(
        _aggr_affine_elu_kernel,
        out_shape=jax.ShapeDtypeStruct((rows, cols), dtype),
        grid=grid,
        in_specs=[data_spec, data_spec, data_spec, vec_spec, vec_spec],
        out_specs=data_spec,
        input_output_aliases={0: 0} if donate_z_low else {},
        compiler_params=pltpu.CompilerParams(dimension_semantics=("parallel",)),
    )(a, b, c, scale, shift)

    if lane_dense:
        out = out.reshape(-1)[:total].reshape(E, F)
    return out


def pool_elu(x: jax.Array, batch_index: jax.Array, num_graphs: int) -> jax.Array:
    """Readout of SupSCN.forward: ELU(concat([gmp(x,b), gap(x,b)], dim=1)).
    Single-invocation kernel; segments resolved with masked reductions
    (num_graphs is a small static int, loop is unrolled)."""
    E, F = x.shape
    bi = batch_index.astype(jnp.int32).reshape(E, 1)
    return pl.pallas_call(
        functools.partial(_segment_pool_elu_kernel, num_graphs=num_graphs),
        out_shape=jax.ShapeDtypeStruct((num_graphs, 2 * F), x.dtype),
    )(x, bi)


# ----------------------------- module mirror --------------------------------


class SupSCNPallas:
    """JAX/Pallas mirror of the PyTorch SupSCN module (hyperparameters plus the
    forward-pass pieces that have a concrete spec)."""

    def __init__(self, n_edge_features, hidden_dim, hidden_layers,
                 n_output_features, kappa=3, p_dropout=0.0, batch_norm=True):
        self.n_edge_features = n_edge_features
        self.in_node_features = 0
        self.hidden_dim = hidden_dim
        self.hidden_layers = hidden_layers
        self.n_output_features = n_output_features
        self.dense_channels = [hidden_dim * 2, hidden_dim, n_output_features]
        self.kappa = kappa
        self.p_dropout = p_dropout
        self.batch_norm = batch_norm

    def aggr_x(self, x_dict, **kwargs):
        return aggr_x(x_dict["z_low"], x_dict["z_up"], x_dict["z_har"], **kwargs)

    def layer_step(self, x_dict, gamma, beta, running_mean, running_var, eps=1e-5):
        """Fused `aggr_x -> BatchNorm1d(folded stats) -> ELU` from SupSCN.forward.

        z_low/z_up/z_har are dead after aggregation in SupSCN.forward, so the
        first input is aliased to the output (input_output_aliases={0: 0})."""
        # TODO(synk): training-mode BatchNorm (batch statistics over the edge
        # dimension) would need an extra reduction pass; folded/running stats
        # (eval-mode BN) are used here.
        scale = gamma / jnp.sqrt(running_var + eps)
        shift = beta - running_mean * scale
        if not self.batch_norm:
            scale = jnp.ones_like(scale)
            shift = jnp.zeros_like(shift)
        return aggr_bn_elu(x_dict["z_low"], x_dict["z_up"], x_dict["z_har"],
                           scale, shift, donate_z_low=True)

    def readout(self, x, batch_index, num_graphs):
        """x = ELU(concat([gmp(x, batch), gap(x, batch)], dim=1)) from forward."""
        return pool_elu(x, batch_index, num_graphs)

    def forward(self, *args, **kwargs):
        # TODO(synk): SCLayer (simplicial convolution) and the output MLP are
        # not defined in the provided spec, so the full SupSCN.forward cannot
        # be implemented faithfully here.
        raise NotImplementedError


# ----------------------------- smoke test ------------------------------------


def _elu(y):
    return jnp.where(y > 0, y, jnp.exp(jnp.minimum(y, 0.0)) - 1.0)


if __name__ == "__main__":
    key = jax.random.PRNGKey(0)
    n_edges, hidden_dim = 512, 32
    num_graphs = 2

    net = SupSCNPallas(
        n_edge_features=4,
        hidden_dim=hidden_dim,
        hidden_layers=2,
        n_output_features=3,
        kappa=3,
        p_dropout=0.0,
        batch_norm=True,
    )

    k1, k2, k3, k4, k5, k6, k7 = jax.random.split(key, 7)
    x_dict = {
        "z_low": jax.random.normal(k1, (n_edges, hidden_dim), dtype=jnp.float32),
        "z_up":  jax.random.normal(k2, (n_edges, hidden_dim), dtype=jnp.float32),
        "z_har": jax.random.normal(k3, (n_edges, hidden_dim), dtype=jnp.float32),
    }
    gamma = 1.0 + 0.1 * jax.random.normal(k4, (hidden_dim,), dtype=jnp.float32)
    beta = 0.1 * jax.random.normal(k5, (hidden_dim,), dtype=jnp.float32)
    mean = 0.1 * jax.random.normal(k6, (hidden_dim,), dtype=jnp.float32)
    var = jax.random.uniform(k7, (hidden_dim,), dtype=jnp.float32,
                             minval=0.5, maxval=1.5)
    eps = 1e-5

    # Plain-JAX references (computed before any aliased pallas_call).
    ref_agg = x_dict["z_low"] + x_dict["z_up"] + x_dict["z_har"]
    scale = gamma / jnp.sqrt(var + eps)
    shift = beta - mean * scale
    ref_layer = _elu(ref_agg * scale + shift)

    # 1) pure aggregation — small block_rows to exercise a multi-block grid.
    agg = jax.block_until_ready(net.aggr_x(x_dict, block_rows=32))
    assert agg.shape == (n_edges, hidden_dim)
    assert jnp.allclose(agg, ref_agg, atol=1e-6), "aggr_x mismatch"

    # 2) ragged/padding path: E*F not a multiple of 128.
    E2, F2 = 50, 24
    a2 = jax.random.normal(k1, (E2, F2), dtype=jnp.float32)
    b2 = jax.random.normal(k2, (E2, F2), dtype=jnp.float32)
    c2 = jax.random.normal(k3, (E2, F2), dtype=jnp.float32)
    agg2 = jax.block_until_ready(aggr_x(a2, b2, c2))
    assert jnp.allclose(agg2, a2 + b2 + c2, atol=1e-6), "ragged aggr_x mismatch"

    # 3) fused aggregation + folded-BN affine + ELU, lane-dense path.
    out = jax.block_until_ready(net.layer_step(x_dict, gamma, beta, mean, var, eps=eps))
    assert out.shape == (n_edges, hidden_dim)
    assert jnp.allclose(out, ref_layer, atol=1e-5), "fused aggr+BN+ELU mismatch"

    # 4) fused kernel, non-lane-dense fallback path (F does not divide 128).
    s2 = jnp.ones((F2,), jnp.float32) * 0.7
    t2 = jnp.linspace(-0.5, 0.5, F2, dtype=jnp.float32)
    out2 = jax.block_until_ready(aggr_bn_elu(a2, b2, c2, s2, t2))
    ref2 = _elu((a2 + b2 + c2) * s2 + t2)
    assert jnp.allclose(out2, ref2, atol=1e-5), "fallback fused path mismatch"

    # 5) readout: ELU(concat([global_max_pool, global_mean_pool], dim=1)).
    batch_index = jnp.concatenate([
        jnp.zeros((n_edges // 2,), jnp.int32),
        jnp.ones((n_edges - n_edges // 2,), jnp.int32),
    ])
    pooled = jax.block_until_ready(net.readout(out, batch_index, num_graphs))
    assert pooled.shape == (num_graphs, 2 * hidden_dim)
    ref_rows = []
    for g in range(num_graphs):
        m = (batch_index == g)[:, None]
        mx = jnp.max(jnp.where(m, out, -jnp.inf), axis=0)
        sm = jnp.sum(jnp.where(m, out, 0.0), axis=0)
        cnt = jnp.maximum(jnp.sum(m.astype(jnp.float32)), 1.0)
        ref_rows.append(jnp.concatenate([mx, sm / cnt]))
    ref_pool = _elu(jnp.stack(ref_rows))
    assert jnp.allclose(pooled, ref_pool, atol=1e-5), "pool/readout mismatch"

    print("KERNEL_OK")
</pallas_src>

<mosaic_0001>
module attributes {stable_mosaic.version = 11 : i64} {
  func.func @_aggr_kernel(%arg0: i32, %arg1: memref<32x128xf32, #tpu.memory_space<vmem>>, %arg2: memref<32x128xf32, #tpu.memory_space<vmem>>, %arg3: memref<32x128xf32, #tpu.memory_space<vmem>>, %arg4: memref<32x128xf32, #tpu.memory_space<vmem>>) attributes {dimension_semantics = [#tpu.dimension_semantics<parallel>], iteration_bounds = array<i64: 4>, scalar_prefetch = 0 : i64, scratch_operands = 0 : i64, tpu.core_type = #tpu.core_type<tc>, window_params = [{transform_indices = @transform_0, window_bounds = array<i64: 32, 128>}, {transform_indices = @transform_1, window_bounds = array<i64: 32, 128>}, {transform_indices = @transform_2, window_bounds = array<i64: 32, 128>}, {transform_indices = @transform_3, window_bounds = array<i64: 32, 128>}]} {
    %c0 = arith.constant 0 : index
    %c0_0 = arith.constant 0 : index
    %0 = vector.load %arg1[%c0, %c0_0] : memref<32x128xf32, #tpu.memory_space<vmem>>, vector<32x128xf32>
    %c0_1 = arith.constant 0 : index
    %c0_2 = arith.constant 0 : index
    %1 = vector.load %arg2[%c0_1, %c0_2] : memref<32x128xf32, #tpu.memory_space<vmem>>, vector<32x128xf32>
    %2 = arith.addf %0, %1 : vector<32x128xf32>
    %c0_3 = arith.constant 0 : index
    %c0_4 = arith.constant 0 : index
    %3 = vector.load %arg3[%c0_3, %c0_4] : memref<32x128xf32, #tpu.memory_space<vmem>>, vector<32x128xf32>
    %4 = arith.addf %2, %3 : vector<32x128xf32>
    %c0_5 = arith.constant 0 : index
    %c0_6 = arith.constant 0 : index
    %5 = vector.load %arg4[%c0_5, %c0_6] : memref<32x128xf32, #tpu.memory_space<vmem>>, vector<32x128xf32>
    tpu.vector_store %arg4[%c0_5, %c0_6], %4 {strides = array<i32>} : memref<32x128xf32, #tpu.memory_space<vmem>>, vector<32x128xf32>,
    return
  }
  func.func @transform_0(%arg0: i32) -> (i32, i32) {
    %c0_i32 = arith.constant 0 : i32
    %c0_i32_0 = arith.constant 0 : i32
    return %arg0, %c0_i32 : i32, i32
  }
  func.func @transform_1(%arg0: i32) -> (i32, i32) {
    %c0_i32 = arith.constant 0 : i32
    %c0_i32_0 = arith.constant 0 : i32
    return %arg0, %c0_i32 : i32, i32
  }
  func.func @transform_2(%arg0: i32) -> (i32, i32) {
    %c0_i32 = arith.constant 0 : i32
    %c0_i32_0 = arith.constant 0 : i32
    return %arg0, %c0_i32 : i32, i32
  }
  func.func @transform_3(%arg0: i32) -> (i32, i32) {
    %c0_i32 = arith.constant 0 : i32
    %c0_i32_0 = arith.constant 0 : i32
    return %arg0, %c0_i32 : i32, i32
  }
}

</mosaic_0001>

<bundles_post_ra>
// kernel: tpu_custom_call.1
= control target key start
LH: loop header
LB: loop body
LE: loop exit
PB: predicated region body
PF: predicated region fallthrough
CT: control target
= control target key end

     0   :  { %s953_s0 = inlined_call_operand.hbm [shape: f32[128,128], index: 0, kind: input, shape index: {}]   ;;  %s954_s1 = inlined_call_operand.hbm [shape: f32[128,128], index: 1, kind: input, shape index: {}]   ;;  %s955_s2 = inlined_call_operand.hbm [shape: f32[128,128], index: 2, kind: input, shape index: {}]   ;;  %s956_s3 = inlined_call_operand.hbm [shape: f32[128,128], index: 3, kind: output, shape index: {}]  }
   0x1   :  { %963 = sst [smem:[#allocation12_spill]] %s953_s0 }
   0x2   :  { %8 = vsyncpa [#allocation3], 0 }
   0x3   :  { %10 = vsyncpa [#allocation3 + $0x1], 0 }
   0x4   :  { %11 = vsyncpa [#allocation6], 0 }
   0x5   :  { %13 = vsyncpa [#allocation6 + $0x1], 0 }
   0x6   :  { %14 = vsyncpa [#allocation4], 0 }
   0x7   :  { %16 = vsyncpa [#allocation4 + $0x1], 0  ;;  %s700_s12 = smov 0   ;;  %s702_s13 = smov 0  }
   0x8   :  { %s704_s14 = smov 0   ;;  %s706_s15 = smov 0  }
   0x9 LB: > { %s721_s16 = sadd.s32 4294967295, %s670_s15   ;;  %s424_s17 = sadd.s32 4294967294, %s670_s15   ;;  %s670_s15 = sphi %s706_s15, %s981_s15   ;;  %s666_s14 = sphi %s704_s14, %s980_s14   ;;  %s662_s13 = sphi %s702_s13, %s979_s13   ;;  %s658_s12 = sphi %s700_s12, %s978_s12  }
   0xa   : > { %s725_s18 = sadd.s32 1, %s670_s15   ;;  %s29_s19 = sadd.s32 1, %s666_s14 }
   0xb   : > { %s26_s20 = ssub.s32 %s670_s15, %s725_s18  ;;  %p36_p0 = scmp.ne.s32.totalorder %s666_s14, %s662_s13 }
   0xc   : > { %p27_p1 = scmp.eq.s32.totalorder %s26_s20, 0  ;;  %p37_p2 = scmp.eq.s32.totalorder %s670_s15, 0 }
   0xd   : > { %p42_p3 = scmp.ne.s32.totalorder %s662_s13, %s658_s12  ;;  %p43_p4 = scmp.eq.s32.totalorder %s721_s16, 0 }
   0xe   : > { %s737_s21 = scalar_select %p27_p1, %s666_s14, %s29_s19  }
   0xf   : > { %p38_p5 = por %p37_p2, %p36_p0  ;;  %p739_p6 = por %p43_p4, %p42_p3 }
  0x10   : > { %p118_p7 = scmp.eq.s32.totalorder %s721_s16, 3  ;;  %p124_p8 = scmp.eq.s32.totalorder %s424_s17, 3 }
  0x11   : > { %s964_s22 = scalar_select %p739_p6, 1, 0 }
  0x12   : > { %p472_p9 = scmp.lt.s32.totalorder %s670_s15, 4  ;;  %p745_p10 = por %p118_p7, %p36_p0 }
  0x13   : > { %p749_p11 = por %p124_p8, %p42_p3  ;;  %s144_s25 = sand.u32 1, %s666_s14  }
  0x14   : > { %s965_s23 = scalar_select %p745_p10, 1, 0 }
  0x15   : > { %s966_s24 = scalar_select %p749_p11, 1, 0 }
  0x16   : > { %s755_s26 = sshll.u32 %s670_s15, 9  ;;  %s759_s27 = sshll.u32 %s144_s25, 5 }
  0x17   : > { %p761_p12 = pnand %p472_p9, %p38_p5  ;;  %s165_s29 = sand.u32 1, %s670_s15  }
  0x18   : > { %s770_s5 = scalar_lea.hbm %s954_s1, %s755_s26  ;;  %s169_s6 = scalar_lea.vmem [#allocation5], %s759_s27 }
  0x19   : > { %s176_s7 = sshll.u32 %s169_s6, 4  ;;  %s776_s8 = scalar_lea.sflag [#allocation6], %s165_s29  ;;  %s773_s7 = int_to_ptr.vmem [resolvable:$true] %s176_s7 }
  0x1a   : > { %s510_s9 = scalar_lea.hbm %s770_s5, 512  ;;  %p782_p1 = pneg %p761_p12 }
  0x1b   : > { %p511_p0 = scmp.ne.s32.totalorder %s770_s5, %s510_s9  ;;  %s515_s19 = scalar_lea.hbm %s954_s1, 2048 }
  0x1c   : > { %p516_p4 = scmp.lt.u32.totalorder %s770_s5, %s954_s1  ;;  %p517_p5 = scmp.lt.u32.totalorder %s515_s19, %s510_s9 }
  0x1d   : > { %p513_p2 = pnand %p782_p1, %p511_p0  ;;  %p519_p8 = scmp.lt.u32.totalorder %s510_s9, %s770_s5 }
  0x1e   : > { %p518_p7 = por %p517_p5, %p516_p4 }
  0x1f   : > { %p514_p3 = pneg %p513_p2 }
  0x20   : > { %p520_p9 = por %p519_p8, %p518_p7 }
  0x22   : > { %p521_p13 = pnand %p520_p9, %p514_p3 }
  0x24   : > { %524 = shalt.err (!%p521_p13)
}
  0x25   : > { %s525_s29 = scalar_lea.vmem %s773_s7, 512  ;;  %s672_s4 = smov [#allocation5]  }
  0x26   : > { %p526_p0 = scmp.ne.s32.totalorder %s773_s7, %s525_s29  ;;  %s530_s6 = sshll.u32 %s672_s4, 4  ;;  %s531_s6 = int_to_ptr.vmem [resolvable:$false] %s530_s6 }
  0x27   : > { %s532_s11 = scalar_lea.vmem %s531_s6, 1024  ;;  %p533_p10 = scmp.lt.s32.totalorder %s773_s7, %s531_s6 }
  0x28   : > { %p528_p2 = pnand %p526_p0, %p782_p1  ;;  %p534_p6 = scmp.lt.s32.totalorder %s532_s11, %s525_s29 }
  0x2a   : > { %p529_p11 = pneg %p528_p2  ;;  %p535_p4 = por %p534_p6, %p533_p10 }
  0x2c   : > { %p536_p5 = pnand %p535_p4, %p529_p11 }
  0x2e   : > { %539 = shalt.err (!%p536_p5)
}
  0x2f   : > { %s959_s9 = smov 128   ;;  %s961_s17 = smov 8  }
  0x30   : > { %464 = dma.hbm_to_vmem [thread:$0]  (!%p761_p12), %s770_s5, 512, %s773_s7, %s776_s8, %s959_s9, %s959_s9, %s961_s17  }
  0x31   : > { %p205_p6 = scmp.lt.s32.totalorder %s670_s15, 5  ;;  %s969_s0 = sld [smem:[#allocation12_spill]] }
  0x32   : > { %p970_p10 = scmp.ge.s32.totalorder %s670_s15, 1  ;;  %s148_s4 = scalar_lea.vmem [#allocation2], %s759_s27 }
  0x33   : > { %s155_s6 = sshll.u32 %s148_s4, 4  ;;  %s827_s5 = scalar_lea.sflag [#allocation3], %s144_s25  ;;  %s823_s6 = int_to_ptr.vmem [resolvable:$true] %s155_s6 }
  0x34   : > { %p818_p11 = pnand %p970_p10, %p205_p6 }
  0x36   : > { %s971_s29 = scalar_select %p818_p11, 1, 0 }
  0x37   : > { %s814_s30 = scalar_lea.hbm %s969_s0, %s755_s26  ;;  %s545_s20 = scalar_lea.hbm %s969_s0, 2048 }
  0x38   : > { %s540_s7 = scalar_lea.hbm %s814_s30, 512  ;;  %p546_p8 = scmp.lt.u32.totalorder %s814_s30, %s969_s0 }
  0x39   : > { %p541_p13 = scmp.ne.s32.totalorder %s814_s30, %s540_s7  ;;  %p547_p9 = scmp.lt.u32.totalorder %s545_s20, %s540_s7 }
  0x3a   : > { %p549_p2 = scmp.lt.u32.totalorder %s540_s7, %s814_s30 }
  0x3b   : > { %p543_p3 = pnand %p541_p13, %p782_p1  ;;  %p548_p0 = por %p547_p9, %p546_p8 }
  0x3d   : > { %p544_p7 = pneg %p543_p3  ;;  %p550_p4 = por %p549_p2, %p548_p0 }
  0x3f   : > { %p551_p5 = pnand %p550_p4, %p544_p7 }
  0x41   : > { %554 = shalt.err (!%p551_p5)
}
  0x42   : > { %s555_s25 = scalar_lea.vmem %s823_s6, 512  ;;  %s675_s4 = smov [#allocation2]  }
  0x43   : > { %p556_p6 = scmp.ne.s32.totalorder %s823_s6, %s555_s25  ;;  %s560_s11 = sshll.u32 %s675_s4, 4  ;;  %s561_s11 = int_to_ptr.vmem [resolvable:$false] %s560_s11 }
  0x44   : > { %s562_s9 = scalar_lea.vmem %s561_s11, 1024  ;;  %p563_p3 = scmp.lt.s32.totalorder %s823_s6, %s561_s11 }
  0x45   : > { %p558_p10 = pnand %p556_p6, %p782_p1  ;;  %p564_p11 = scmp.lt.s32.totalorder %s562_s9, %s555_s25 }
  0x47   : > { %p559_p13 = pneg %p558_p10  ;;  %p565_p8 = por %p564_p11, %p563_p3 }
  0x49   : > { %p566_p9 = pnand %p565_p8, %p559_p13 }
  0x4b   : > { %569 = shalt.err (!%p566_p9)
}
  0x4c   : > { %s972_s17 = smov 8   ;;  %s973_s7 = smov 128  }
  0x4d   : > { %461 = dma.hbm_to_vmem [thread:$0]  (!%p761_p12), %s814_s30, 512, %s823_s6, %s827_s5, %s973_s7, %s973_s7, %s972_s17  }
  0x4e   : > { %s858_s4 = scalar_lea.hbm %s955_s2, %s755_s26  ;;  %s190_s25 = scalar_lea.vmem [#allocation7], %s759_s27 }
  0x4f   : > { %s197_s11 = sshll.u32 %s190_s25, 4  ;;  %s570_s9 = scalar_lea.hbm %s858_s4, 512  ;;  %s861_s11 = int_to_ptr.vmem [resolvable:$true] %s197_s11 }
  0x50   : > { %p571_p11 = scmp.ne.s32.totalorder %s858_s4, %s570_s9  ;;  %s575_s6 = scalar_lea.hbm %s955_s2, 2048 }
  0x51   : > { %p576_p2 = scmp.lt.u32.totalorder %s858_s4, %s955_s2  ;;  %p577_p4 = scmp.lt.u32.totalorder %s575_s6, %s570_s9 }
  0x52   : > { %p573_p7 = pnand %p571_p11, %p782_p1  ;;  %p579_p6 = scmp.lt.u32.totalorder %s570_s9, %s858_s4 }
  0x53   : > { %p578_p5 = por %p577_p4, %p576_p2 }
  0x54   : > { %p574_p0 = pneg %p573_p7 }
  0x55   : > { %p580_p10 = por %p579_p6, %p578_p5 }
  0x57   : > { %p581_p13 = pnand %p580_p10, %p574_p0 }
  0x59   : > { %584 = shalt.err (!%p581_p13)
}
  0x5a   : > { %s585_s27 = scalar_lea.vmem %s861_s11, 512  ;;  %s676_s0 = smov [#allocation7]  }
  0x5b   : > { %p586_p3 = scmp.ne.s32.totalorder %s861_s11, %s585_s27  ;;  %s590_s19 = sshll.u32 %s676_s0, 4  ;;  %s591_s19 = int_to_ptr.vmem [resolvable:$false] %s590_s19 }
  0x5c   : > { %s592_s20 = scalar_lea.vmem %s591_s19, 1024  ;;  %p593_p11 = scmp.lt.s32.totalorder %s861_s11, %s591_s19 }
  0x5d   : > { %p588_p8 = pnand %p586_p3, %p782_p1  ;;  %p594_p7 = scmp.lt.s32.totalorder %s592_s20, %s585_s27 }
  0x5f   : > { %p589_p9 = pneg %p588_p8  ;;  %p595_p2 = por %p594_p7, %p593_p11 }
  0x61   : > { %p596_p4 = pnand %p595_p2, %p589_p9 }
  0x63   : > { %599 = shalt.err (!%p596_p4)
}
  0x64   : > { %467 = dma.hbm_to_vmem [thread:$0]  (!%p761_p12), %s858_s4, 512, %s861_s11, %s776_s8, %s973_s7, %s973_s7, %s972_s17  }
  0x65   : > { %p974_p1 = scmp.ne.s32.totalorder %s971_s29, 0 }
  0x66   : > { %s891_s10 = sand.u32 (!%p974_p1), 1, %s662_s13   ;;  %p975_p0 = scmp.ne.s32.totalorder (!%p974_p1), %s964_s22, 0 }
  0x67   : > { %209 = sbr.rel (%p974_p1) target bundleno = 141 (0x8d), region = 32  ;;  %s437_s25 = sshll.u32 (!%p974_p1), %s891_s10, 5 }
  0x68   : > { %s212_s9 = scalar_lea.sflag (!%p974_p1), [#allocation3], %s891_s10  ;;  %s215_s30 = scalar_lea.vmem (!%p974_p1), [#allocation2], %s437_s25 }
  0x6e   : > { %645 = dma.done.wait (%p975_p0), %s212_s9, 512  }
  0x6f   : > { %647 = vsyncadd (%p975_p0), %s212_s9, 4294966784  ;;  %s220_s28 = sand.u32 1, %s721_s16   ;;  %s224_s29 = scalar_lea.vmem [#allocation5], %s437_s25 }
  0x70   : > { %s221_s8 = scalar_lea.sflag [#allocation6], %s220_s28 }
  0x71   : > { %649 = dma.done.wait (%p975_p0), %s221_s8, 1024  }
  0x72   : > { %651 = vsyncadd (%p975_p0), %s221_s8, 4294966272  ;;  %v270_v0 = vld [vmem:[%s215_s30] sm:$0xff]  ;;  %s233_s17 = scalar_lea.vmem [#allocation7], %s437_s25  ;;  %v271_v4 = vld [vmem:[%s215_s30 + $0x8] sm:$0xff]  ;;  %s265_s7 = scalar_lea.vmem [#allocation8], %s437_s25 }
  0x73   : > { %v274_v1 = vld [vmem:[%s224_s29] sm:$0xff]  ;;  %v275_v5 = vld [vmem:[%s224_s29 + $0x8] sm:$0xff]  ;;  %s308_s4 = sshll.u32 %s265_s7, 4  ;;  %v272_v8 = vld [vmem:[%s215_s30 + $0x10] sm:$0xff]  ;;  %s449_s11 = sshll.u32 %s721_s16, 9  ;;  %s905_s4 = int_to_ptr.vmem [resolvable:$true] %s308_s4 }
  0x74   : > { %v282_v2 = vld [vmem:[%s233_s17] sm:$0xff]  ;;  %v278_v3 = vadd.f32 %v274_v1, %v270_v0  ;;  %v283_v6 = vld [vmem:[%s233_s17 + $0x8] sm:$0xff]  ;;  %v279_v7 = vadd.f32 %v275_v5, %v271_v4  ;;  %v276_v9 = vld [vmem:[%s224_s29 + $0x10] sm:$0xff]  ;;  %s910_s16 = scalar_lea.hbm %s956_s3, %s449_s11  ;;  %s295_s5 = scalar_lea.sflag [#allocation4], %s891_s10 }
  0x75   : > { %v284_v10 = vld [vmem:[%s233_s17 + $0x10] sm:$0xff]  ;;  %v280_v12 = vadd.f32 %v276_v9, %v272_v8  ;;  %v273_v13 = vld [vmem:[%s215_s30 + $0x18] sm:$0xff]  ;;  %s600_s26 = scalar_lea.vmem %s905_s4, 512  ;;  %p976_p5 = scmp.ne.s32.totalorder %s965_s23, 0 }
  0x76   : > { %v286_v11 = vadd.f32 %v282_v2, %v278_v3  ;;  %v277_v14 = vld [vmem:[%s224_s29 + $0x18] sm:$0xff]  ;;  %v287_v16 = vadd.f32 %v283_v6, %v279_v7  ;;  %p601_p12 = scmp.ne.s32.totalorder %s905_s4, %s600_s26  ;;  %s677_s27 = smov [#allocation8]  }
  0x77   : > { %v285_v15 = vld [vmem:[%s233_s17 + $0x18] sm:$0xff]  ;;  %v281_v17 = vadd.f32 %v277_v14, %v273_v13  ;;  %v288_v18 = vadd.f32 %v284_v10, %v280_v12  ;;  %s604_s0 = sshll.u32 %s677_s27, 4  ;;  %s605_s0 = int_to_ptr.vmem [resolvable:$false] %s604_s0 }
  0x78   : > { %290 = vst [vmem:[%s265_s7] sm:$0xff] %v286_v11  ;;  %291 = vst [vmem:[%s265_s7 + $0x8] sm:$0xff] %v287_v16  ;;  %p602_p6 = pnand %p601_p12, %p976_p5  ;;  %s606_s19 = scalar_lea.vmem %s605_s0, 1024 }
  0x79   : > { %v289_v19 = vadd.f32 %v285_v15, %v281_v17  ;;  %292 = vst [vmem:[%s265_s7 + $0x10] sm:$0xff] %v288_v18  ;;  %p607_p13 = scmp.lt.s32.totalorder %s905_s4, %s605_s0  ;;  %p608_p3 = scmp.lt.s32.totalorder %s606_s19, %s600_s26 }
  0x7a   : > { %p603_p10 = pneg %p602_p6 }
  0x7b   : > { %293 = vst [vmem:[%s265_s7 + $0x18] sm:$0xff] %v289_v19  ;;  %p609_p8 = por %p608_p3, %p607_p13 }
  0x7d   : > { %p610_p9 = pnand %p609_p8, %p603_p10 }
  0x7f   : > { %613 = shalt.err (!%p610_p9)
}
  0x80   : > { %s614_s20 = scalar_lea.hbm %s910_s16, 512  ;;  %s618_s30 = scalar_lea.hbm %s956_s3, 2048 }
  0x81   : > { %p615_p11 = scmp.ne.s32.totalorder %s910_s16, %s614_s20  ;;  %p619_p4 = scmp.lt.u32.totalorder %s910_s16, %s956_s3 }
  0x82   : > { %p620_p1 = scmp.lt.u32.totalorder %s618_s30, %s614_s20  ;;  %p622_p12 = scmp.lt.u32.totalorder %s614_s20, %s910_s16 }
  0x83   : > { %p616_p7 = pnand %p615_p11, %p976_p5 }
  0x84   : > { %p621_p0 = por %p620_p1, %p619_p4 }
  0x85   : > { %p617_p2 = pneg %p616_p7 }
  0x86   : > { %p623_p6 = por %p622_p12, %p621_p0 }
  0x88   : > { %p624_p10 = pnand %p623_p6, %p617_p2 }
  0x8a   : > { %627 = shalt.err (!%p624_p10)
}
  0x8b   : > { %s678_s29 = smov 128   ;;  %s679_s17 = smov 8  }
  0x8c   : > { %456 = dma.vmem_to_hbm [thread:$0]  (%p976_p5), %s905_s4, 512, %s910_s16, %s295_s5, %s678_s29, %s678_s29, %s679_s17  }
  0x8d PF: > { %p473_p13 = scmp.ge.s32.totalorder %s670_s15, 2  ;;  %s323_s7 = sand.u32 1, %s658_s12  }
  0x8e   : > { %p977_p3 = scmp.ne.s32.totalorder %s966_s24, 0  ;;  %s324_s11 = scalar_lea.sflag [#allocation4], %s323_s7 }
  0x90   : > { %p469_p8 = pnand %p473_p13, %p977_p3 }
  0x92   : > { %653 = dma.done.wait (!%p469_p8), %s324_s11, 512  }
  0x93   : > { %655 = vsyncadd (!%p469_p8), %s324_s11, 4294966784  ;;  %p19_p9 = scmp.ge.s32.totalorder %s725_s18, 6   ;;  %s978_s12 = smov %s662_s13 }
  0x94   : > { %s979_s13 = smov %s666_s14  ;;  %s980_s14 = smov %s737_s21 }
  0x95   : > { %s981_s15 = smov %s725_s18  ;;  %21 = sbr.rel (!%p19_p9) target bundleno = 9 (0x9), region = 101 }
  0x9c   :  { %329 = vsyncpa [#allocation3], 1 }
  0x9d   :  { %331 = vsyncpa [#allocation3 + $0x1], 1 }
  0x9e   :  { %332 = vsyncpa [#allocation6], 1 }
  0x9f   :  { %334 = vsyncpa [#allocation6 + $0x1], 1 }
  0xa0   :  { %335 = vsyncpa [#allocation4], 1 }
  0xa1   :  { %337 = vsyncpa [#allocation4 + $0x1], 1 }

</bundles_post_ra>
